<compile_context>
chip_gen: v7x
topology: tpu7x:2x2x1
jax: 0.10.0
libtpu: 0.0.40
codegen_flags: <defaults>
</compile_context>

<pallas_src>
import math

import jax
import jax.numpy as jnp
import numpy as np
from jax.experimental import pallas as pl
from jax.experimental.pallas import tpu as pltpu


def film_gen_kernel(text_ref, ab_ref, waht_ref, wal_ref,
                    w1_ref, b1_ref, w2_ref, b2_ref, out_ref):
    """One grid step == one batch tile of TB elements.

    text_ref : (TB, S, T)     text sequences for this batch tile
    ab_ref   : (TB, Hatt)     per-element attention bias = ht @ W_ah[:, T:].T + b_ah
                              (ht projection hoisted to the wrapper; ht = ones on first_layer)
    waht_ref : (T, Hatt)      attention-MLP weight, text half (W_ah[:, :T].T)
    wal_ref  : (1, Hatt)      attention scorer weight; its bias cancels under softmax
    w1_ref   : (T, Hfilm),  b1_ref : (1, Hfilm)      film_gen_hidden
    w2_ref   : (Hfilm, OP), b2_ref : (1, OP)         film_gen_last_layer (lane-padded to OP)
    out_ref  : (TB, OP)       gammas_betas (lane-padded)
    """
    text = text_ref[...]                                     # (TB, S, T)
    TB, S, T = text.shape

    # ---- TextAttention: additive attention over the sequence axis ----
    # One MXU matmul with M = TB*S rows (layout-free reshape: S=8 is exactly one sublane tile).
    flat = text.reshape(TB * S, T)
    pre = jnp.dot(flat, waht_ref[...], preferred_element_type=jnp.float32)  # (TB*S, Hatt)
    pre = pre.reshape(TB, S, -1) + ab_ref[...][:, None, :]                  # (TB, S, Hatt)
    hidden = jnp.tanh(pre)

    # Scorer: N=1 matmul replaced by VPU multiply + lane reduction over Hatt.
    scores = jnp.sum(hidden * wal_ref[...][None, :, :], axis=-1,
                     keepdims=True)                           # (TB, S, 1)

    # Softmax over the sequence axis (S sits on the sublane axis of each batch slab).
    m = jnp.max(scores, axis=1, keepdims=True)                # (TB, 1, 1)
    e = jnp.exp(scores - m)                                   # (TB, S, 1)
    denom = jnp.sum(e, axis=1, keepdims=True)                 # (TB, 1, 1)
    attn = e * pl.reciprocal(denom, approx=True)              # (TB, S, 1)

    text_vec = jnp.sum(attn * text, axis=1)                   # (TB, T)

    # ---- FiLM generator MLP: relu(Linear) -> Linear ----
    h = (jnp.dot(text_vec, w1_ref[...], preferred_element_type=jnp.float32)
         + b1_ref[...])
    h = jnp.maximum(h, 0.0)                                   # (TB, Hfilm)
    out_ref[...] = (jnp.dot(h, w2_ref[...], preferred_element_type=jnp.float32)
                    + b2_ref[...])                            # (TB, OP) — lane-dense store


def pack_film_params(raw_params, text_size, lane_pad=128):
    """Repack PyTorch-style (out, in) weights for the kernel: (in, out) layout, last FiLM
    layer zero-padded to a lane-dense output width (multiple of 128)."""
    W_ah, b_ah, W_al, b_al, W1, b1, W2, b2 = raw_params
    T = text_size
    out_dim = W2.shape[0]
    out_pad = ((out_dim + lane_pad - 1) // lane_pad) * lane_pad
    out_pad = max(out_pad, lane_pad)

    waht = jnp.asarray(W_ah[:, :T].T, jnp.float32)            # (T, Hatt)  text half
    wahh = jnp.asarray(W_ah[:, T:].T, jnp.float32)            # (T, Hatt)  hidden half
    bah = jnp.asarray(b_ah, jnp.float32).reshape(1, -1)       # (1, Hatt)
    wal = jnp.asarray(W_al, jnp.float32).reshape(1, -1)       # (1, Hatt)  (b_al dropped:
    #                                                           softmax is shift-invariant)
    w1 = jnp.asarray(W1.T, jnp.float32)                       # (T, Hfilm)
    b1r = jnp.asarray(b1, jnp.float32).reshape(1, -1)         # (1, Hfilm)
    w2 = jnp.asarray(W2.T, jnp.float32)                       # (Hfilm, out_dim)
    b2r = jnp.asarray(b2, jnp.float32).reshape(1, -1)         # (1, out_dim)

    w2p = jnp.zeros((w2.shape[0], out_pad), jnp.float32).at[:, :out_dim].set(w2)
    b2p = jnp.zeros((1, out_pad), jnp.float32).at[:, :out_dim].set(b2r)

    return dict(waht=waht, wahh=wahh, bah=bah, wal=wal,
                w1=w1, b1=b1r, w2=w2p, b2=b2p,
                out_dim=out_dim, out_pad=out_pad)


def multihop_text_film_gen(text_sbt, params, ht=None, tb_max=128):
    """Forward matching MultiHopTextFilmGen.forward(text, first_layer) with use_feedback=False.

    text_sbt : (S, B, T) float32 -- PyTorch layout (seq, batch, text_size)
    ht       : optional (B, T) previous attended vector; None => first_layer (ones)
    returns  : (B, 2 * n_feature_map_per_block) gammas_betas
    """
    # TODO(synk): the module's recurrent self.ht = text_vec update (for subsequent hops)
    # would need text_vec emitted as a second kernel output; only gammas_betas is returned.
    S, B, T = text_sbt.shape
    text = jnp.transpose(text_sbt, (1, 0, 2)).astype(jnp.float32)   # (B, S, T)

    # ht projection hoisted out of the kernel (once per batch, not per grid step).
    if ht is None:
        # first_layer fast path: ones @ wahh == column sums of wahh, folded into b_ah.
        ab = jnp.sum(params['wahh'], axis=0, keepdims=True) + params['bah']   # (1, Hatt)
        ab = jnp.broadcast_to(ab, (B, ab.shape[1]))
    else:
        ab = ht.astype(jnp.float32) @ params['wahh'] + params['bah']          # (B, Hatt)

    Hatt = params['waht'].shape[1]
    Hfilm = params['w1'].shape[1]
    out_pad = params['out_pad']
    out_dim = params['out_dim']

    # Batch tiling: one grid step handles TB elements; pad B to a multiple of TB.
    TB = B if B <= tb_max else tb_max
    n_tiles = -(-B // TB)
    B_pad = n_tiles * TB
    if B_pad != B:
        text = jnp.pad(text, ((0, B_pad - B), (0, 0), (0, 0)))
        ab = jnp.pad(ab, ((0, B_pad - B), (0, 0)))

    cost = pl.CostEstimate(
        flops=2 * B_pad * (S * T * Hatt + S * Hatt + T * Hfilm + Hfilm * out_pad),
        transcendentals=B_pad * (S * Hatt + S + 1),
        bytes_accessed=4 * (B_pad * S * T + B_pad * Hatt + T * Hatt + Hatt
                            + T * Hfilm + Hfilm + Hfilm * out_pad + out_pad
                            + B_pad * out_pad),
    )

    out = pl.pallas_call(
        film_gen_kernel,
        out_shape=jax.ShapeDtypeStruct((B_pad, out_pad), jnp.float32),
        grid=(n_tiles,),
        in_specs=[
            pl.BlockSpec((TB, S, T), lambda b: (b, 0, 0)),      # text tile
            pl.BlockSpec((TB, Hatt), lambda b: (b, 0)),         # attention bias tile
            pl.BlockSpec((T, Hatt), lambda b: (0, 0)),          # waht (resident)
            pl.BlockSpec((1, Hatt), lambda b: (0, 0)),          # wal
            pl.BlockSpec((T, Hfilm), lambda b: (0, 0)),         # w1
            pl.BlockSpec((1, Hfilm), lambda b: (0, 0)),         # b1
            pl.BlockSpec((Hfilm, out_pad), lambda b: (0, 0)),   # w2 (lane padded)
            pl.BlockSpec((1, out_pad), lambda b: (0, 0)),       # b2 (lane padded)
        ],
        out_specs=pl.BlockSpec((TB, out_pad), lambda b: (b, 0)),
        compiler_params=pltpu.CompilerParams(
            dimension_semantics=("parallel",)),
        cost_estimate=cost,
    )(text, ab, params['waht'], params['wal'], params['w1'], params['b1'],
      params['w2'], params['b2'])

    return out[:B, :out_dim]


def linear_params(key, fan_in, fan_out):
    """Deterministic nn.Linear-style init: U(-1/sqrt(fan_in), 1/sqrt(fan_in))."""
    kw, kb = jax.random.split(key)
    bound = 1.0 / math.sqrt(fan_in)
    W = jax.random.uniform(kw, (fan_out, fan_in), jnp.float32, -bound, bound)
    b = jax.random.uniform(kb, (fan_out,), jnp.float32, -bound, bound)
    return W, b


def reference_forward(text_sbt, raw_params):
    """Pure-JAX reference matching the PyTorch forward (first_layer=True, no feedback)."""
    W_ah, b_ah, W_al, b_al, W1, b1, W2, b2 = raw_params
    S, B, T = text_sbt.shape
    ht = jnp.ones((B, T), jnp.float32)
    prev = jnp.broadcast_to(ht[None], (S, B, T))
    concat = jnp.concatenate([text_sbt, prev], axis=-1)            # (S, B, 2T)
    hid = jnp.tanh(concat @ W_ah.T + b_ah)                         # (S, B, Hatt)
    scores = hid @ W_al.T + b_al                                   # (S, B, 1)
    w = jax.nn.softmax(scores, axis=0)
    text_vec = jnp.sum(w * text_sbt, axis=0)                       # (B, T)
    h = jax.nn.relu(text_vec @ W1.T + b1)
    return h @ W2.T + b2                                           # (B, 2*nfmap)


if __name__ == "__main__":
    # Small shapes consistent with the module's forward.
    S, B, T = 8, 2, 32          # seq, batch, text_size
    Hatt = 16                   # config['film_attention_size_hidden']
    Hfilm = 32                  # config['film_gen_hidden_size']
    n_fmap = 4                  # n_feature_map_per_block -> output = 2 * 4 = 8

    key = jax.random.PRNGKey(0)
    k_ah, k_al, k1, k2, k_x = jax.random.split(key, 5)

    W_ah, b_ah = linear_params(k_ah, 2 * T, Hatt)      # TextAttention hidden MLP
    W_al, b_al = linear_params(k_al, Hatt, 1)          # TextAttention scorer
    W1, b1 = linear_params(k1, T, Hfilm)               # film_gen_hidden (text_size + 0)
    W2, b2 = linear_params(k2, Hfilm, 2 * n_fmap)      # film_gen_last_layer

    raw_params = (W_ah, b_ah, W_al, b_al, W1, b1, W2, b2)
    params = pack_film_params(raw_params, text_size=T)

    text = jax.random.normal(k_x, (S, B, T), jnp.float32)   # PyTorch layout (seq, batch, text)

    gammas_betas = multihop_text_film_gen(text, params)     # first_layer == True
    gammas_betas = jax.block_until_ready(gammas_betas)

    ref = reference_forward(text, raw_params)
    # Tolerance loosened slightly vs. a pure-f32 path because the softmax denominator uses
    # the EUP approximate reciprocal (pl.reciprocal(approx=True)).
    np.testing.assert_allclose(np.asarray(gammas_betas), np.asarray(ref),
                               rtol=1e-2, atol=1e-2)

    print("KERNEL_OK")
</pallas_src>

<mosaic_0001>
module attributes {stable_mosaic.version = 11 : i64} {
  func.func @film_gen_kernel(%arg0: i32, %arg1: memref<2x8x32xf32, #tpu.memory_space<vmem>>, %arg2: memref<2x16xf32, #tpu.memory_space<vmem>>, %arg3: memref<32x16xf32, #tpu.memory_space<vmem>>, %arg4: memref<1x16xf32, #tpu.memory_space<vmem>>, %arg5: memref<32x32xf32, #tpu.memory_space<vmem>>, %arg6: memref<1x32xf32, #tpu.memory_space<vmem>>, %arg7: memref<32x128xf32, #tpu.memory_space<vmem>>, %arg8: memref<1x128xf32, #tpu.memory_space<vmem>>, %arg9: memref<2x128xf32, #tpu.memory_space<vmem>>) attributes {dimension_semantics = [#tpu.dimension_semantics<parallel>], iteration_bounds = array<i64: 1>, scalar_prefetch = 0 : i64, scratch_operands = 0 : i64, tpu.core_type = #tpu.core_type<tc>, window_params = [{transform_indices = @transform_0, window_bounds = array<i64: 2, 8, 32>}, {transform_indices = @transform_1, window_bounds = array<i64: 2, 16>}, {pipeline_mode = #tpu.pipeline_mode<synchronous>, transform_indices = @transform_2, window_bounds = array<i64: 32, 16>}, {pipeline_mode = #tpu.pipeline_mode<synchronous>, transform_indices = @transform_3, window_bounds = array<i64: 1, 16>}, {pipeline_mode = #tpu.pipeline_mode<synchronous>, transform_indices = @transform_4, window_bounds = array<i64: 32, 32>}, {pipeline_mode = #tpu.pipeline_mode<synchronous>, transform_indices = @transform_5, window_bounds = array<i64: 1, 32>}, {pipeline_mode = #tpu.pipeline_mode<synchronous>, transform_indices = @transform_6, window_bounds = array<i64: 32, 128>}, {pipeline_mode = #tpu.pipeline_mode<synchronous>, transform_indices = @transform_7, window_bounds = array<i64: 1, 128>}, {transform_indices = @transform_8, window_bounds = array<i64: 2, 128>}]} {
    %c0 = arith.constant 0 : index
    %c0_0 = arith.constant 0 : index
    %c0_1 = arith.constant 0 : index
    %0 = vector.load %arg1[%c0, %c0_0, %c0_1] : memref<2x8x32xf32, #tpu.memory_space<vmem>>, vector<2x8x32xf32>
    %1 = vector.shape_cast %0 : vector<2x8x32xf32> to vector<16x32xf32>
    %c0_2 = arith.constant 0 : index
    %c0_3 = arith.constant 0 : index
    %2 = vector.load %arg3[%c0_2, %c0_3] : memref<32x16xf32, #tpu.memory_space<vmem>>, vector<32x16xf32>
    %cst = arith.constant dense<0.000000e+00> : vector<16x16xf32>
    %3 = tpu.matmul %1, %2, %cst {dimension_numbers = #tpu.dot_dimension_numbers<[1], [0], [0], [1], [0, 0, 1, 1], [], []>} : vector<16x32xf32>, vector<32x16xf32>, vector<16x16xf32> -> vector<16x16xf32>
    %4 = vector.shape_cast %3 : vector<16x16xf32> to vector<2x8x16xf32>
    %c0_4 = arith.constant 0 : index
    %c0_5 = arith.constant 0 : index
    %5 = vector.load %arg2[%c0_4, %c0_5] : memref<2x16xf32, #tpu.memory_space<vmem>>, vector<2x16xf32>
    %6 = vector.shape_cast %5 : vector<2x16xf32> to vector<2x1x16xf32>
    %7 = vector.broadcast %6 : vector<2x1x16xf32> to vector<2x8x16xf32>
    %8 = arith.addf %4, %7 : vector<2x8x16xf32>
    %9 = math.tanh %8 : vector<2x8x16xf32>
    %c0_6 = arith.constant 0 : index
    %c0_7 = arith.constant 0 : index
    %10 = vector.load %arg4[%c0_6, %c0_7] : memref<1x16xf32, #tpu.memory_space<vmem>>, vector<1x16xf32>
    %11 = vector.shape_cast %10 : vector<1x16xf32> to vector<1x1x16xf32>
    %12 = vector.broadcast %11 : vector<1x1x16xf32> to vector<2x8x16xf32>
    %13 = arith.mulf %9, %12 : vector<2x8x16xf32>
    %cst_8 = arith.constant dense<0.000000e+00> : vector<2x8xf32>
    %14 = vector.multi_reduction <add>, %13, %cst_8 [2] : vector<2x8x16xf32> to vector<2x8xf32>
    %15 = vector.shape_cast %14 : vector<2x8xf32> to vector<2x8x1xf32>
    %cst_9 = arith.constant dense<0xFF800000> : vector<2x1xf32>
    %16 = vector.multi_reduction <maximumf>, %15, %cst_9 [1] : vector<2x8x1xf32> to vector<2x1xf32>
    %17 = vector.shape_cast %16 : vector<2x1xf32> to vector<2x1x1xf32>
    %18 = vector.broadcast %17 : vector<2x1x1xf32> to vector<2x8x1xf32>
    %19 = arith.subf %15, %18 : vector<2x8x1xf32>
    %20 = math.exp %19 : vector<2x8x1xf32>
    %cst_10 = arith.constant dense<0.000000e+00> : vector<2x1xf32>
    %21 = vector.multi_reduction <add>, %20, %cst_10 [1] : vector<2x8x1xf32> to vector<2x1xf32>
    %22 = vector.shape_cast %21 : vector<2x1xf32> to vector<2x1x1xf32>
    %23 = tpu.reciprocal %22 {approx = true} : vector<2x1x1xf32> -> vector<2x1x1xf32>
    %24 = vector.broadcast %23 : vector<2x1x1xf32> to vector<2x8x1xf32>
    %25 = arith.mulf %20, %24 : vector<2x8x1xf32>
    %26 = vector.broadcast %25 : vector<2x8x1xf32> to vector<2x8x32xf32>
    %27 = arith.mulf %26, %0 : vector<2x8x32xf32>
    %cst_11 = arith.constant dense<0.000000e+00> : vector<2x32xf32>
    %28 = vector.multi_reduction <add>, %27, %cst_11 [1] : vector<2x8x32xf32> to vector<2x32xf32>
    %c0_12 = arith.constant 0 : index
    %c0_13 = arith.constant 0 : index
    %29 = vector.load %arg5[%c0_12, %c0_13] : memref<32x32xf32, #tpu.memory_space<vmem>>, vector<32x32xf32>
    %cst_14 = arith.constant dense<0.000000e+00> : vector<2x32xf32>
    %30 = tpu.matmul %28, %29, %cst_14 {dimension_numbers = #tpu.dot_dimension_numbers<[1], [0], [0], [1], [0, 0, 1, 1], [], []>} : vector<2x32xf32>, vector<32x32xf32>, vector<2x32xf32> -> vector<2x32xf32>
    %c0_15 = arith.constant 0 : index
    %c0_16 = arith.constant 0 : index
    %31 = vector.load %arg6[%c0_15, %c0_16] : memref<1x32xf32, #tpu.memory_space<vmem>>, vector<1x32xf32>
    %32 = vector.broadcast %31 : vector<1x32xf32> to vector<2x32xf32>
    %33 = arith.addf %30, %32 : vector<2x32xf32>
    %cst_17 = arith.constant 0.000000e+00 : f32
    %34 = vector.broadcast %cst_17 : f32 to vector<2x32xf32>
    %35 = arith.maximumf %33, %34 : vector<2x32xf32>
    %c0_18 = arith.constant 0 : index
    %c0_19 = arith.constant 0 : index
    %36 = vector.load %arg7[%c0_18, %c0_19] : memref<32x128xf32, #tpu.memory_space<vmem>>, vector<32x128xf32>
    %cst_20 = arith.constant dense<0.000000e+00> : vector<2x128xf32>
    %37 = tpu.matmul %35, %36, %cst_20 {dimension_numbers = #tpu.dot_dimension_numbers<[1], [0], [0], [1], [0, 0, 1, 1], [], []>} : vector<2x32xf32>, vector<32x128xf32>, vector<2x128xf32> -> vector<2x128xf32>
    %c0_21 = arith.constant 0 : index
    %c0_22 = arith.constant 0 : index
    %38 = vector.load %arg8[%c0_21, %c0_22] : memref<1x128xf32, #tpu.memory_space<vmem>>, vector<1x128xf32>
    %39 = vector.broadcast %38 : vector<1x128xf32> to vector<2x128xf32>
    %40 = arith.addf %37, %39 : vector<2x128xf32>
    %c0_23 = arith.constant 0 : index
    %c0_24 = arith.constant 0 : index
    %41 = vector.load %arg9[%c0_23, %c0_24] : memref<2x128xf32, #tpu.memory_space<vmem>>, vector<2x128xf32>
    tpu.vector_store %arg9[%c0_23, %c0_24], %40 {strides = array<i32>} : memref<2x128xf32, #tpu.memory_space<vmem>>, vector<2x128xf32>,
    return
  }
  func.func @transform_0(%arg0: i32) -> (i32, i32, i32) {
    %c0_i32 = arith.constant 0 : i32
    %c0_i32_0 = arith.constant 0 : i32
    %c0_i32_1 = arith.constant 0 : i32
    return %arg0, %c0_i32, %c0_i32_0 : i32, i32, i32
  }
  func.func @transform_1(%arg0: i32) -> (i32, i32) {
    %c0_i32 = arith.constant 0 : i32
    %c0_i32_0 = arith.constant 0 : i32
    return %arg0, %c0_i32 : i32, i32
  }
  func.func @transform_2(%arg0: i32) -> (i32, i32) {
    %c0_i32 = arith.constant 0 : i32
    %c0_i32_0 = arith.constant 0 : i32
    %c0_i32_1 = arith.constant 0 : i32
    return %c0_i32, %c0_i32_0 : i32, i32
  }
  func.func @transform_3(%arg0: i32) -> (i32, i32) {
    %c0_i32 = arith.constant 0 : i32
    %c0_i32_0 = arith.constant 0 : i32
    %c0_i32_1 = arith.constant 0 : i32
    return %c0_i32, %c0_i32_0 : i32, i32
  }
  func.func @transform_4(%arg0: i32) -> (i32, i32) {
    %c0_i32 = arith.constant 0 : i32
    %c0_i32_0 = arith.constant 0 : i32
    %c0_i32_1 = arith.constant 0 : i32
    return %c0_i32, %c0_i32_0 : i32, i32
  }
  func.func @transform_5(%arg0: i32) -> (i32, i32) {
    %c0_i32 = arith.constant 0 : i32
    %c0_i32_0 = arith.constant 0 : i32
    %c0_i32_1 = arith.constant 0 : i32
    return %c0_i32, %c0_i32_0 : i32, i32
  }
  func.func @transform_6(%arg0: i32) -> (i32, i32) {
    %c0_i32 = arith.constant 0 : i32
    %c0_i32_0 = arith.constant 0 : i32
    %c0_i32_1 = arith.constant 0 : i32
    return %c0_i32, %c0_i32_0 : i32, i32
  }
  func.func @transform_7(%arg0: i32) -> (i32, i32) {
    %c0_i32 = arith.constant 0 : i32
    %c0_i32_0 = arith.constant 0 : i32
    %c0_i32_1 = arith.constant 0 : i32
    return %c0_i32, %c0_i32_0 : i32, i32
  }
  func.func @transform_8(%arg0: i32) -> (i32, i32) {
    %c0_i32 = arith.constant 0 : i32
    %c0_i32_0 = arith.constant 0 : i32
    return %arg0, %c0_i32 : i32, i32
  }
}

</mosaic_0001>

<bundles_post_ra>
// kernel: tpu_custom_call.1
= control target key start
LH: loop header
LB: loop body
LE: loop exit
PB: predicated region body
PF: predicated region fallthrough
CT: control target
= control target key end

     0   :  { %13 = vsyncpa [#allocation3], 0  ;;  %s807_s0 = inlined_call_operand.hbm [shape: f32[2,8,32], index: 0, kind: input, shape index: {}]   ;;  %s808_s1 = inlined_call_operand.vmem [shape: f32[2,16], index: 1, kind: input, shape index: {}]   ;;  %s809_s2 = inlined_call_operand.vmem [shape: f32[32,16], index: 2, kind: input, shape index: {}]   ;;  %s810_s3 = inlined_call_operand.hbm [shape: f32[1,16], index: 3, kind: input, shape index: {}]   ;;  %s811_s4 = inlined_call_operand.vmem [shape: f32[32,32], index: 4, kind: input, shape index: {}]   ;;  %s812_s5 = inlined_call_operand.hbm [shape: f32[1,32], index: 5, kind: input, shape index: {}]   ;;  %s813_s6 = inlined_call_operand.vmem [shape: f32[32,128], index: 6, kind: input, shape index: {}]   ;;  %s814_s7 = inlined_call_operand.vmem [shape: f32[1,128], index: 7, kind: input, shape index: {}]   ;;  %s815_s8 = inlined_call_operand.hbm [shape: f32[2,128], index: 8, kind: output, shape index: {}]  }
   0x1   :  { %14 = vsyncpa [#allocation6], 0 }
   0x2   :  { %15 = vsyncpa [#allocation4], 0  ;;  %s641_s27 = smov [#allocation5]   ;;  %s642_s29 = smov [#allocation2]  }
   0x3   :  { %s38_s28 = sshll.u32 %s641_s27, 4  ;;  %s21_s30 = sshll.u32 %s642_s29, 4  ;;  %s39_s28 = int_to_ptr.vmem [resolvable:$true] %s38_s28  ;;  %s696_s30 = int_to_ptr.vmem [resolvable:$true] %s21_s30 }
   0x4   :  { %s547_s11 = scalar_lea.hbm %s810_s3, 16 }
   0x5   :  { %p548_p0 = scmp.ne.s32.totalorder %s810_s3, %s547_s11  ;;  %p551_p1 = scmp.lt.u32.totalorder %s547_s11, %s810_s3 }
   0x7   :  { %p553_p2 = pnand %p551_p1, %p548_p0 }
   0x9   :  { %556 = shalt.err (!%p553_p2)
}
   0xa   :  { %s557_s16 = scalar_lea.vmem %s39_s28, 16  ;;  %s561_s17 = scalar_lea.vmem %s39_s28, 32 }
   0xb   :  { %p558_p3 = scmp.ne.s32.totalorder %s39_s28, %s557_s16  ;;  %p562_p4 = scmp.lt.s32.totalorder %s39_s28, %s39_s28 }
   0xc   :  { %p563_p5 = scmp.lt.s32.totalorder %s561_s17, %s557_s16 }
   0xe   :  { %p564_p6 = por %p563_p5, %p562_p4 }
  0x10   :  { %p565_p7 = pnand %p564_p6, %p558_p3 }
  0x12   :  { %568 = shalt.err (!%p565_p7)
}
  0x13   :  { %41 = dma.hbm_to_vmem [thread:$0]  %s810_s3, 16, %s39_s28, [#allocation6]  }
  0x14   :  { %s569_s22 = scalar_lea.hbm %s807_s0, 256 }
  0x15   :  { %p570_p8 = scmp.ne.s32.totalorder %s807_s0, %s569_s22  ;;  %p573_p9 = scmp.lt.u32.totalorder %s569_s22, %s807_s0 }
  0x17   :  { %p575_p10 = pnand %p573_p9, %p570_p8 }
  0x19   :  { %578 = shalt.err (!%p575_p10)
}
  0x1a   :  { %s579_s27 = scalar_lea.vmem %s696_s30, 256  ;;  %p584_p12 = scmp.lt.s32.totalorder %s696_s30, %s696_s30 }
  0x1b   :  { %p580_p11 = scmp.ne.s32.totalorder %s696_s30, %s579_s27  ;;  %p585_p13 = scmp.lt.s32.totalorder %s579_s27, %s579_s27 }
  0x1d   :  { %p586_p0 = por %p585_p13, %p584_p12 }
  0x1f   :  { %p587_p1 = pnand %p586_p0, %p580_p11 }
  0x21   :  { %590 = shalt.err (!%p587_p1)
}
  0x22   :  { %s643_s3 = smov 128   ;;  %s644_s28 = smov 8  }
  0x23   :  { %27 = dma.hbm_to_vmem [thread:$0]  %s807_s0, 256, %s696_s30, [#allocation3], %s643_s3, %s643_s3, %s644_s28  }
  0x24   :  { %s645_s10 = smov [#allocation7]   ;;  %s591_s14 = scalar_lea.hbm %s812_s5, 16 }
  0x25   :  { %s50_s11 = sshll.u32 %s645_s10, 4  ;;  %p592_p2 = scmp.ne.s32.totalorder %s812_s5, %s591_s14  ;;  %s51_s11 = int_to_ptr.vmem [resolvable:$true] %s50_s11 }
  0x26   :  { %p595_p3 = scmp.lt.u32.totalorder %s591_s14, %s812_s5 }
  0x28   :  { %p597_p4 = pnand %p595_p3, %p592_p2 }
  0x2a   :  { %600 = shalt.err (!%p597_p4)
}
  0x2b   :  { %s601_s19 = scalar_lea.vmem %s51_s11, 16  ;;  %s605_s0 = scalar_lea.vmem %s51_s11, 32 }
  0x2c   :  { %p602_p5 = scmp.ne.s32.totalorder %s51_s11, %s601_s19  ;;  %p606_p6 = scmp.lt.s32.totalorder %s51_s11, %s51_s11 }
  0x2d   :  { %p607_p7 = scmp.lt.s32.totalorder %s605_s0, %s601_s19 }
  0x2f   :  { %p608_p8 = por %p607_p7, %p606_p6 }
  0x31   :  { %p609_p9 = pnand %p608_p8, %p602_p5 }
  0x33   :  { %612 = shalt.err (!%p609_p9)
}
  0x34   :  { %53 = dma.hbm_to_vmem [thread:$0]  %s812_s5, 16, %s51_s11, [#allocation6]  }
  0x35   :  { %635 = dma.done.wait [#allocation3], 256  }
  0x36   :  { %636 = vsyncadd [#allocation3], 4294967040 }
  0x37   :  { %637 = dma.done.wait [#allocation6], 32  }
  0x38   :  { %638 = vsyncadd [#allocation6], 4294967264  ;;  %vm73_vm0 = vcmask 261120   ;;  %v69_v0 = vld [vmem:[%s809_s2] sm:$0xff]  ;;  %v70_v1 = vld [vmem:[%s809_s2 + $0x8] sm:$0xff]  ;;  %v168_v10 = vlaneseq  ;;  %vm202_vm1 = vcmask 130048  }
  0x39   :  { %v71_v2 = vld [vmem:[%s809_s2 + $0x10] sm:$0xff]  ;;  %v505_v3 = vpack.c.bf16 %v70_v1, %v69_v0  ;;  %v72_v4 = vld [vmem:[%s809_s2 + $0x18] sm:$0xff]  ;;  %v751_v5 = vld [vmem:[#allocation2] sm:$0xff]  ;;  %v646_v8 = vmov 1966171168   ;;  %v647_v35 = vmov 0.0|0.0  }
  0x3a   :  { %v509_v6 = vpack.c.bf16 %v72_v4, %v71_v2  ;;  %480 = vmatprep.mubr.msk.f32.mxu0 %vm73_vm0, %v751_v5  ;;  %v755_v7 = vld [vmem:[#allocation2 + $0x8] sm:$0xff]  ;;  %v166_v9 = vunpack.c.l.s4 %v646_v8  ;;  %v169_v12 = vshrl.u32 %v168_v10, 7  ;;  %v450_v13 = vld.sshfl [vmem:[%s808_s1] sm:$0x11 pattern:$0x75316420]  ;;  %513 = vmatprep.subr.bf16.mxu1 %v647_v35 }
  0x3b   :  { %506 = vmatprep.subr.bf16.mxu0 %v505_v3  ;;  %v164_v14 = vcombine.high %v450_v13, %v450_v13  ;;  %v451_v25 = vld [vmem:[#allocation5] ss:$0 sm:$0xff]  ;;  %v259_v32 = vld [vmem:[%s811_s4] sm:$0xff]  ;;  %v260_v33 = vld [vmem:[%s811_s4 + $0x8] sm:$0xff]  ;;  %vm648_vm2 = vmmov 0   ;;  %v649_v38 = vmov 0.0  }
  0x3c   :  { %508 = vmatpush3.bf16.msra.mxu0 %v505_v3  ;;  %v167_v11 = vunpack.c.0.s8 %v166_v9  ;;  %v181_v17 = vsub.s32 0, %v169_v12  ;;  %v261_v34 = vld [vmem:[%s811_s4 + $0x10] sm:$0xff]  ;;  %v514_v36 = vpack.c.bf16 %v260_v33, %v259_v32  ;;  %v262_v37 = vld [vmem:[%s811_s4 + $0x18] sm:$0xff]  ;;  %491 = vmatprep.mubr.msk.f32.mxu1 %vm648_vm2, %v649_v38  ;;  %v347_v40 = vld [vmem:[%s813_s6] sm:$0xff]  ;;  %vm272_vm3 = vcmask 1041409   ;;  %s650_s21 = smov [#allocation8]  }
  0x3d   :  { %510 = vmatprep.subr.bf16.mxu0 %v509_v6  ;;  %v517_v39 = vpack.c.bf16 %v262_v37, %v261_v34  ;;  %v348_v41 = vld [vmem:[%s813_s6 + $0x8] sm:$0xff]  ;;  %v350_v33 = vld [vmem:[%s813_s6 + $0x18] sm:$0xff]  ;;  %s438_s22 = sshll.u32 %s650_s21, 4  ;;  %s439_s22 = int_to_ptr.vmem [resolvable:$true] %s438_s22 }
  0x3e   :  { %v170_v15 = vsub.s32 %v167_v11, %v169_v12  ;;  %515 = vmatpush3.bf16.msra.mxu1 %v514_v36  ;;  %v520_v42 = vpack.c.bf16 %v348_v41, %v347_v40  ;;  %v454_v40 = vld [vmem:[%s814_s7] ss:$0 sm:$0xff]  ;;  %p618_p11 = scmp.lt.s32.totalorder %s439_s22, %s439_s22 }
  0x3f   :  { %516 = vmatprep.subr.bf16.mxu1 %v647_v35 }
  0x40   :  { %512 = vmatpush3.bf16.msra.mxu0 %v509_v6  ;;  %v178_v16 = vrot.slane %v164_v14, %v170_v15  ;;  %v171_v18 = vrot.slane %v450_v13, %v170_v15 }
  0x41   :  { %519 = vmatprep.subr.bf16.mxu0 %v647_v35 }
  0x42   :  { %v186_v19 = vrot.slane %v178_v16, %v181_v17  ;;  %v182_v20 = vrot.slane %v171_v18, %v181_v17  ;;  %518 = vmatpush3.bf16.msra.mxu1 %v517_v39 }
  0x43   :  { %481 = vmatmul.mubr.msk.f32.vlgmr.msra.gmra.mrb[0].mxu0 %vm73_vm0, %v755_v7 }
  0x44   :  { %502 = vmatprep.mubr.msk.f32.mxu0 %vm648_vm2, %v649_v38  ;;  %521 = vmatpush3.bf16.msra.mxu0 %v520_v42 }
  0x45   :  { %522 = vmatprep.subr.bf16.mxu0 %v647_v35  ;;  %v452_v35 = vld [vmem:[#allocation7] ss:$0 sm:$0xff] }
 0x116   :  { %v482_v21 = vpop.f32.mrb[0].mxu0 }
 0x117   :  { %v190_v22 = vadd.f32 %v482_v21, %v186_v19  ;;  %v146_v23 = vpop.f32.mrb[1].mxu0 }
 0x118   :  { %v189_v24 = vadd.f32 %v182_v20, %v146_v23 }
 0x119   :  { %535 = vtanh.f32 %v190_v22 }
 0x11a   :  { %537 = vtanh.f32 %v189_v24 }
 0x123   :  { %v536_v26 = vpop.eup %535 }
 0x124   :  { %v538_v27 = vpop.eup %537  ;;  %v201_v30 = vmul.f32 %v536_v26, %v451_v25 }
 0x125   :  { %v200_v28 = vmul.f32 %v538_v27, %v451_v25 }
 0x126   :  { %v206_v31 = vsel %vm202_vm1, %v201_v30, 0.0 }
 0x127   :  { %v203_v29 = vsel %vm202_vm1, %v200_v28, 0.0 }
 0x128   :  { %204 = vadd.xlane.f32.xlu0 %v203_v29 }
 0x12c   :  { %207 = vadd.xlane.f32.xlu0 %v206_v31 }
 0x1b5   :  { %v205_v43 = vpop.xlane.xlu0 %204 }
 0x1b6   :  { %v209_v44 = vrot.slane %v205_v43, 4 }
 0x1b8   :  { %v210_v45 = vmax.f32 %v205_v43, %v209_v44 }
 0x1b9   :  { %v208_v46 = vpop.xlane.xlu0 %207 }
 0x1ba   :  { %v211_v47 = vrot.slane %v210_v45, 2  ;;  %v215_v48 = vrot.slane %v208_v46, 4 }
 0x1bc   :  { %v212_v49 = vmax.f32 %v210_v45, %v211_v47  ;;  %v216_v50 = vmax.f32 %v208_v46, %v215_v48 }
 0x1be   :  { %v213_v51 = vrot.slane %v212_v49, 1  ;;  %v217_v52 = vrot.slane %v216_v50, 2 }
 0x1c0   :  { %v214_v53 = vmax.f32 %v212_v49, %v213_v51  ;;  %v218_v54 = vmax.f32 %v216_v50, %v217_v52 }
 0x1c2   :  { %v221_v55 = vsub.f32 %v205_v43, %v214_v53  ;;  %v219_v56 = vrot.slane %v218_v54, 1 }
 0x1c4   :  { %v223_v57 = vmul.f32 1.442695, %v221_v55  ;;  %v220_v58 = vmax.f32 %v218_v54, %v219_v56 }
 0x1c6   :  { %539 = vpow2.f32 %v223_v57  ;;  %v222_v59 = vsub.f32 %v208_v46, %v220_v58 }
 0x1c8   :  { %v225_v60 = vmul.f32 1.442695, %v222_v59 }
 0x1ca   :  { %541 = vpow2.f32 %v225_v60 }
 0x1d0   :  { %v540_v61 = vpop.eup %539 }
 0x1d1   :  { %v227_v62 = vrot.slane %v540_v61, 4 }
 0x1d3   :  { %v228_v63 = vadd.f32 %v540_v61, %v227_v62 }
 0x1d4   :  { %v542_v0 = vpop.eup %541 }
 0x1d5   :  { %v229_v1 = vrot.slane %v228_v63, 2  ;;  %v233_v2 = vrot.slane %v542_v0, 4 }
 0x1d7   :  { %v234_v3 = vadd.f32 %v542_v0, %v233_v2  ;;  %v230_v4 = vadd.f32 %v229_v1, %v228_v63 }
 0x1d9   :  { %v235_v6 = vrot.slane %v234_v3, 2  ;;  %v231_v8 = vrot.slane %v230_v4, 1 }
 0x1db   :  { %v236_v9 = vadd.f32 %v235_v6, %v234_v3  ;;  %v232_v10 = vadd.f32 %v231_v8, %v230_v4 }
 0x1dd   :  { %v237_v11 = vrot.slane %v236_v9, 1  ;;  %543 = vrcp.f32 %v232_v10 }
 0x1df   :  { %v238_v12 = vadd.f32 %v237_v11, %v236_v9 }
 0x1e1   :  { %545 = vrcp.f32 %v238_v12 }
 0x1e7   :  { %v544_v13 = vpop.eup %543 }
 0x1e8   :  { %v241_v14 = vmul.f32 %v544_v13, %v540_v61 }
 0x1ea   :  { %v243_v15 = vmul.f32 %v241_v14, %v751_v5 }
 0x1eb   :  { %v546_v16 = vpop.eup %545 }
 0x1ec   :  { %v242_v17 = vmul.f32 %v546_v16, %v542_v0  ;;  %v245_v18 = vsel %vm73_vm0, %v243_v15, 0.0 }
 0x1ed   :  { %v246_v19 = vrot.slane %v245_v18, 4 }
 0x1ee   :  { %v244_v20 = vmul.f32 %v242_v17, %v755_v7  ;;  %v349_v7 = vld [vmem:[%s813_s6 + $0x10] sm:$0xff]  ;;  %s613_s6 = scalar_lea.vmem %s439_s22, 32 }
 0x1ef   :  { %v247_v21 = vadd.f32 %v246_v19, %v245_v18  ;;  %v523_v34 = vpack.c.bf16 %v350_v33, %v349_v7  ;;  %p614_p10 = scmp.ne.s32.totalorder %s439_s22, %s613_s6  ;;  %p619_p12 = scmp.lt.s32.totalorder %s613_s6, %s613_s6 }
 0x1f0   :  { %v252_v22 = vsel %vm73_vm0, %v244_v20, 0.0 }
 0x1f1   :  { %v248_v23 = vrot.slane %v247_v21, 2  ;;  %v253_v24 = vrot.slane %v252_v22, 4  ;;  %524 = vmatpush3.bf16.msra.mxu0 %v523_v34  ;;  %p620_p13 = por %p619_p12, %p618_p11 }
 0x1f3   :  { %v249_v25 = vadd.f32 %v248_v23, %v247_v21  ;;  %v254_v26 = vadd.f32 %v253_v24, %v252_v22  ;;  %p621_p0 = pnand %p620_p13, %p614_p10 }
 0x1f5   :  { %v255_v27 = vrot.slane %v254_v26, 2  ;;  %v250_v28 = vrot.slane %v249_v25, 1 }
 0x1f7   :  { %v256_v29 = vadd.f32 %v255_v27, %v254_v26  ;;  %v251_v5 = vadd.f32 %v250_v28, %v249_v25 }
 0x1f9   :  { %v257_v30 = vrot.slane %v256_v29, 1 }
 0x1fb   :  { %v258_v31 = vadd.f32 %v257_v30, %v256_v29 }
 0x1fd   :  { %v273_v32 = vsel %vm272_vm3, %v258_v31, %v251_v5 }
 0x1fe   :  { %492 = vmatmul.mubr.msk.f32.vlgmr.msra.gmra.mrb[0].mxu1 %vm73_vm0, %v273_v32 }
 0x2d1   :  { %v342_v36 = vpop.f32.mrb[0].mxu1 }
 0x2d2   :  { %v343_v37 = vadd.f32 %v452_v35, %v342_v36  ;;  %v493_v38 = vpop.f32.mrb[1].mxu1 }
 0x2d4   :  { %v346_v39 = vmax.f32 %v343_v37, 0.0 }
 0x2d6   :  { %503 = vmatmul.mubr.msk.f32.vlgmr.msra.gmra.mrb[2].mxu0 %vm73_vm0, %v346_v39 }
 0x3a9   :  { %v427_v41 = vpop.f32.mrb[2].mxu0 }
 0x3aa   :  { %v428_v42 = vadd.f32 %v454_v40, %v427_v41  ;;  %v504_v43 = vpop.f32.mrb[3].mxu0 }
 0x3ac   :  { %431 = vst [vmem:[#allocation8] sm:$0x3] %v428_v42 }
 0x3ad   :  { %624 = shalt.err (!%p621_p0)
}
 0x3ae   :  { %s625_s25 = scalar_lea.hbm %s815_s8, 32 }
 0x3af   :  { %p626_p1 = scmp.ne.s32.totalorder %s815_s8, %s625_s25  ;;  %p629_p2 = scmp.lt.u32.totalorder %s625_s25, %s815_s8 }
 0x3b1   :  { %p631_p3 = pnand %p629_p2, %p626_p1 }
 0x3b3   :  { %634 = shalt.err (!%p631_p3)
}
 0x3b4   :  { %441 = dma.vmem_to_hbm [thread:$0]  %s439_s22, 32, %s815_s8, [#allocation4]  }
 0x3b5   :  { %639 = dma.done.wait [#allocation4], 32  }
 0x3b6   :  { %640 = vsyncadd [#allocation4], 4294967264 }
 0x3b7   :  { %445 = vsyncpa [#allocation3], 1 }
 0x3b8   :  { %446 = vsyncpa [#allocation6], 1 }
 0x3b9   :  { %447 = vsyncpa [#allocation4], 1 }

</bundles_post_ra>
